<compile_context>
chip_gen: v5e
topology: v5e:2x2
jax: 0.10.0
libtpu: 0.0.40
codegen_flags: <defaults>
</compile_context>

<pallas_src>
import jax
import jax.numpy as jnp
from jax.experimental import pallas as pl
from jax.experimental.pallas import tpu as pltpu


# ----------------------------------------------------------------------------
# Pallas kernel: masked weighted CE + L1 + GIoU over all B*Q query slots.
# ----------------------------------------------------------------------------
def _make_criterion_kernel(num_classes: int, eos_coef: float):
    no_obj = int(num_classes)
    eos = float(eos_coef)

    def kernel(logits_ref, labels_ref, mask_ref, boxes_ref, out_ref):
        logits = logits_ref[...].astype(jnp.float32)      # (R, C)
        labels = labels_ref[...]                          # (R, 1) int32
        valid = mask_ref[...]                             # (R, 1) f32 in {0,1}
        vb = valid > 0.5                                  # (R, 1) bool

        r, c = logits.shape

        # ----- weighted cross-entropy (nn.CrossEntropyLoss(weight=empty_weight))
        onehot = (jax.lax.broadcasted_iota(jnp.int32, (r, c), 1) == labels
                  ).astype(jnp.float32)                                  # (R, C)
        m = jnp.max(logits, axis=-1, keepdims=True)                      # (R, 1)
        # TODO(synk): for full-scale DETR (large R, C) these lane reductions
        # should become jnp.dot against a ones/weight column to use the MXU.
        lse = m + jnp.log(jnp.sum(jnp.exp(logits - m), axis=-1, keepdims=True))
        logit_y = jnp.sum(logits * onehot, axis=-1, keepdims=True)       # (R, 1)
        nll = lse - logit_y                                              # (R, 1)
        # empty_weight baked in as constants: eos_coef for no-object class.
        w_y = jnp.where(labels == no_obj, jnp.float32(eos), jnp.float32(1.0))
        w_y = jnp.where(vb, w_y, 0.0)                                    # masked
        ce_num = jnp.sum(jnp.sum(w_y * nll, axis=1, keepdims=True),
                         axis=0, keepdims=True)                          # (1, 1)
        ce_den = jnp.sum(jnp.sum(w_y, axis=1, keepdims=True),
                         axis=0, keepdims=True)                          # (1, 1)
        ce = ce_num / ce_den                                             # (1, 1)

        # number of matched boxes (masked count), shared normalizer
        nb = jnp.sum(jnp.sum(valid, axis=1, keepdims=True),
                     axis=0, keepdims=True)                              # (1, 1)
        inv_nb = 1.0 / nb

        boxes = boxes_ref[...].astype(jnp.float32)                       # (R, 8)
        sb = boxes[:, 0:4]                                               # (R, 4)
        tb = boxes[:, 4:8]                                               # (R, 4)

        # ----- L1 box loss: sum over matched |src - tgt| / num_matched
        l1_row = jnp.sum(jnp.abs(sb - tb), axis=-1, keepdims=True)       # (R, 1)
        l1 = jnp.sum(jnp.sum(jnp.where(vb, l1_row, 0.0), axis=1, keepdims=True),
                     axis=0, keepdims=True)                              # (1, 1)
        bbox_loss = l1 * inv_nb

        # ----- GIoU loss: sum over matched (1 - diag(GIoU)) / num_matched
        def xyxy(b):
            cx, cy, bw, bh = b[:, 0:1], b[:, 1:2], b[:, 2:3], b[:, 3:4]
            return cx - 0.5 * bw, cy - 0.5 * bh, cx + 0.5 * bw, cy + 0.5 * bh

        sx0, sy0, sx1, sy1 = xyxy(sb)
        tx0, ty0, tx1, ty1 = xyxy(tb)
        area_s = (sx1 - sx0) * (sy1 - sy0)
        area_t = (tx1 - tx0) * (ty1 - ty0)
        iw = jnp.maximum(jnp.minimum(sx1, tx1) - jnp.maximum(sx0, tx0), 0.0)
        ih = jnp.maximum(jnp.minimum(sy1, ty1) - jnp.maximum(sy0, ty0), 0.0)
        inter = iw * ih
        union = area_s + area_t - inter
        iou = inter / union
        ew = jnp.maximum(sx1, tx1) - jnp.minimum(sx0, tx0)
        eh = jnp.maximum(sy1, ty1) - jnp.minimum(sy0, ty0)
        area_e = ew * eh
        giou = iou - (area_e - union) / area_e                           # (R, 1)
        giou_row = jnp.where(vb, 1.0 - giou, 0.0)                        # (R, 1)
        giou_loss = jnp.sum(jnp.sum(giou_row, axis=1, keepdims=True),
                            axis=0, keepdims=True) * inv_nb              # (1, 1)

        # ----- single lane-dense output block: slots 0/1/2 = ce/bbox/giou
        lane = jax.lax.broadcasted_iota(jnp.int32, (1, 128), 1)
        out_ref[...] = (jnp.where(lane == 0, ce, 0.0)
                        + jnp.where(lane == 1, bbox_loss, 0.0)
                        + jnp.where(lane == 2, giou_loss, 0.0))

    return kernel


def _criterion_losses(logits, labels, match_mask, boxes_packed,
                      num_classes, eos_coef):
    """logits (R,C) ; labels/mask (R,1) ; boxes_packed (R,8) = [src|tgt]."""
    R, C = logits.shape
    # Pad rows to a multiple of 8 (sublane alignment); padded rows are
    # unmatched (mask=0, label=no-object, benign boxes) -> zero contribution.
    Rp = max(8, ((R + 7) // 8) * 8)
    if Rp != R:
        pad = Rp - R
        logits = jnp.pad(logits, ((0, pad), (0, 0)))
        labels = jnp.pad(labels, ((0, pad), (0, 0)),
                         constant_values=num_classes)
        match_mask = jnp.pad(match_mask, ((0, pad), (0, 0)))
        boxes_packed = jnp.pad(boxes_packed, ((0, pad), (0, 0)),
                               constant_values=0.5)

    kernel = _make_criterion_kernel(num_classes, eos_coef)
    out = pl.pallas_call(
        kernel,
        out_shape=jax.ShapeDtypeStruct((1, 128), jnp.float32),
        in_specs=[pl.BlockSpec(memory_space=pltpu.MemorySpace.VMEM)] * 4,
        out_specs=pl.BlockSpec(memory_space=pltpu.MemorySpace.VMEM),
    )(logits, labels, match_mask, boxes_packed)
    return out[0, 0], out[0, 1], out[0, 2]


# ----------------------------------------------------------------------------
# Module-like wrapper (host glue: matching -> dense per-query labels/boxes/mask)
# ----------------------------------------------------------------------------
class SetCriterionPallas:
    def __init__(self, num_classes, eos_coef, matcher=None,
                 weight_dict=None, losses=None):
        self.num_classes = num_classes
        self.eos_coef = eos_coef
        self.matcher = matcher
        self.weight_dict = weight_dict
        self.losses = losses
        # Kept only for reference/tests; the kernel bakes the weights in as
        # compile-time constants (1.0 everywhere, eos_coef for no-object).
        self.empty_weight = jnp.ones((num_classes + 1,),
                                     jnp.float32).at[-1].set(eos_coef)

    def _identity_matcher(self, outputs, targets):
        # TODO(synk): Hungarian matcher is an injected external dependency of
        # the PyTorch module; replaced by a deterministic identity assignment.
        indices = []
        for t in targets:
            nt = t["labels"].shape[0]
            idx = jnp.arange(nt, dtype=jnp.int32)
            indices.append((idx, idx))
        return indices

    def __call__(self, outputs, targets):
        pred_logits = outputs["pred_logits"]          # (B, Q, C)
        pred_boxes = outputs["pred_boxes"]            # (B, Q, 4)
        B, Q, C = pred_logits.shape

        matcher = self.matcher if self.matcher is not None else self._identity_matcher
        indices = matcher(outputs, targets)

        # Scatter target labels / boxes into their matched query slot and build
        # a dense match mask.  No gather of predictions, no concats/transposes;
        # prediction tensors go straight into the kernel.
        labels_full = jnp.full((B, Q), self.num_classes, jnp.int32)
        tboxes_full = jnp.zeros((B, Q, 4), jnp.float32)
        mask_full = jnp.zeros((B, Q), jnp.float32)
        for b, (t, (src, tgt)) in enumerate(zip(targets, indices)):
            labels_full = labels_full.at[b, src].set(t["labels"][tgt].astype(jnp.int32))
            tboxes_full = tboxes_full.at[b, src].set(t["boxes"][tgt].astype(jnp.float32))
            mask_full = mask_full.at[b, src].set(1.0)

        R = B * Q
        boxes_packed = jnp.concatenate(
            [pred_boxes.reshape(R, 4).astype(jnp.float32),
             tboxes_full.reshape(R, 4)], axis=1)                     # (R, 8)

        ce, bbox, giou = _criterion_losses(
            pred_logits.reshape(R, C),
            labels_full.reshape(R, 1),
            mask_full.reshape(R, 1),
            boxes_packed,
            self.num_classes, self.eos_coef)
        return {"loss_ce": ce, "loss_bbox": bbox, "loss_giou": giou}


# ----------------------------------------------------------------------------
# Pure-JAX reference for validation (matched subset only, PyTorch semantics).
# ----------------------------------------------------------------------------
def _reference_losses(logits, labels, sb, tb, w):
    logp = jax.nn.log_softmax(logits, axis=-1)
    nll = -jnp.take_along_axis(logp, labels[:, None], axis=-1)[:, 0]
    wy = w[labels]
    loss_ce = jnp.sum(wy * nll) / jnp.sum(wy)

    n = sb.shape[0]
    loss_bbox = jnp.sum(jnp.abs(sb - tb)) / n

    def xyxy(b):
        cx, cy, bw, bh = b[:, 0], b[:, 1], b[:, 2], b[:, 3]
        return jnp.stack([cx - 0.5 * bw, cy - 0.5 * bh,
                          cx + 0.5 * bw, cy + 0.5 * bh], axis=-1)

    s, t = xyxy(sb), xyxy(tb)
    area_s = (s[:, 2] - s[:, 0]) * (s[:, 3] - s[:, 1])
    area_t = (t[:, 2] - t[:, 0]) * (t[:, 3] - t[:, 1])
    iw = jnp.clip(jnp.minimum(s[:, 2], t[:, 2]) - jnp.maximum(s[:, 0], t[:, 0]), 0)
    ih = jnp.clip(jnp.minimum(s[:, 3], t[:, 3]) - jnp.maximum(s[:, 1], t[:, 1]), 0)
    inter = iw * ih
    union = area_s + area_t - inter
    iou = inter / union
    ew = jnp.maximum(s[:, 2], t[:, 2]) - jnp.minimum(s[:, 0], t[:, 0])
    eh = jnp.maximum(s[:, 3], t[:, 3]) - jnp.minimum(s[:, 1], t[:, 1])
    area_e = ew * eh
    giou = iou - (area_e - union) / area_e
    loss_giou = jnp.sum(1.0 - giou) / n
    return loss_ce, loss_bbox, loss_giou


if __name__ == "__main__":
    key = jax.random.PRNGKey(0)
    B, Q, NUM_CLASSES, T = 2, 8, 7, 4          # C = 8 classes incl. no-object
    C = NUM_CLASSES + 1

    k1, k2, k3, _ = jax.random.split(key, 4)
    pred_logits = jax.random.normal(k1, (B, Q, C), jnp.float32)
    # boxes in cxcywh, kept inside (0,1) with positive w/h
    pred_boxes = jax.nn.sigmoid(jax.random.normal(k2, (B, Q, 4), jnp.float32)) * 0.8 + 0.1
    outputs = {"pred_logits": pred_logits, "pred_boxes": pred_boxes}

    targets = []
    for b in range(B):
        kb1, kb2, k3 = jax.random.split(k3, 3)
        labels = jax.random.randint(kb1, (T,), 0, NUM_CLASSES, jnp.int32)
        boxes = jax.nn.sigmoid(jax.random.normal(kb2, (T, 4), jnp.float32)) * 0.8 + 0.1
        targets.append({"labels": labels, "boxes": boxes})

    criterion = SetCriterionPallas(num_classes=NUM_CLASSES, eos_coef=0.1)
    loss_dict = criterion(outputs, targets)
    loss_dict = jax.tree_util.tree_map(jax.block_until_ready, loss_dict)

    # validate against pure-JAX reference (identity matching -> first T queries)
    m_logits = jnp.concatenate([pred_logits[b, :T] for b in range(B)], 0)
    m_labels = jnp.concatenate([t["labels"] for t in targets], 0)
    m_sboxes = jnp.concatenate([pred_boxes[b, :T] for b in range(B)], 0)
    m_tboxes = jnp.concatenate([t["boxes"] for t in targets], 0)
    ref_ce, ref_bbox, ref_giou = _reference_losses(
        m_logits, m_labels, m_sboxes, m_tboxes, criterion.empty_weight)

    ok = (jnp.allclose(loss_dict["loss_ce"], ref_ce, rtol=1e-5, atol=1e-5)
          and jnp.allclose(loss_dict["loss_bbox"], ref_bbox, rtol=1e-5, atol=1e-5)
          and jnp.allclose(loss_dict["loss_giou"], ref_giou, rtol=1e-5, atol=1e-5))
    if not ok:
        raise AssertionError(
            f"mismatch: {loss_dict} vs ref ({ref_ce}, {ref_bbox}, {ref_giou})")
    print("KERNEL_OK")
</pallas_src>

<mosaic_0001>
module attributes {stable_mosaic.version = 11 : i64} {
  func.func @kernel(%arg0: memref<16x8xf32, #tpu.memory_space<vmem>>, %arg1: memref<16x1xi32, #tpu.memory_space<vmem>>, %arg2: memref<16x1xf32, #tpu.memory_space<vmem>>, %arg3: memref<16x8xf32, #tpu.memory_space<vmem>>, %arg4: memref<1x128xf32, #tpu.memory_space<vmem>>) attributes {dimension_semantics = [], scalar_prefetch = 0 : i64, scratch_operands = 0 : i64, tpu.core_type = #tpu.core_type<tc>} {
    %c0 = arith.constant 0 : index
    %c0_0 = arith.constant 0 : index
    %0 = vector.load %arg0[%c0, %c0_0] : memref<16x8xf32, #tpu.memory_space<vmem>>, vector<16x8xf32>
    %c0_1 = arith.constant 0 : index
    %c0_2 = arith.constant 0 : index
    %1 = vector.load %arg1[%c0_1, %c0_2] : memref<16x1xi32, #tpu.memory_space<vmem>>, vector<16x1xi32>
    %c0_3 = arith.constant 0 : index
    %c0_4 = arith.constant 0 : index
    %2 = vector.load %arg2[%c0_3, %c0_4] : memref<16x1xf32, #tpu.memory_space<vmem>>, vector<16x1xf32>
    %cst = arith.constant 5.000000e-01 : f32
    %3 = vector.broadcast %cst : f32 to vector<16x1xf32>
    %4 = arith.cmpf ogt, %2, %3 : vector<16x1xf32>
    %5 = tpu.iota {dimensions = array<i32: 1>} : vector<16x8xi32>
    %6 = vector.broadcast %1 : vector<16x1xi32> to vector<16x8xi32>
    %7 = arith.cmpi eq, %5, %6 : vector<16x8xi32>
    %8 = arith.extui %7 : vector<16x8xi1> to vector<16x8xi32>
    %9 = arith.sitofp %8 : vector<16x8xi32> to vector<16x8xf32>
    %cst_5 = arith.constant dense<0xFF800000> : vector<16xf32>
    %10 = vector.multi_reduction <maximumf>, %0, %cst_5 [1] : vector<16x8xf32> to vector<16xf32>
    %11 = vector.shape_cast %10 : vector<16xf32> to vector<16x1xf32>
    %12 = vector.broadcast %11 : vector<16x1xf32> to vector<16x8xf32>
    %13 = arith.subf %0, %12 : vector<16x8xf32>
    %14 = math.exp %13 : vector<16x8xf32>
    %cst_6 = arith.constant dense<0.000000e+00> : vector<16xf32>
    %15 = vector.multi_reduction <add>, %14, %cst_6 [1] : vector<16x8xf32> to vector<16xf32>
    %16 = vector.shape_cast %15 : vector<16xf32> to vector<16x1xf32>
    %17 = math.log %16 : vector<16x1xf32>
    %18 = arith.addf %11, %17 : vector<16x1xf32>
    %19 = arith.mulf %0, %9 : vector<16x8xf32>
    %cst_7 = arith.constant dense<0.000000e+00> : vector<16xf32>
    %20 = vector.multi_reduction <add>, %19, %cst_7 [1] : vector<16x8xf32> to vector<16xf32>
    %21 = vector.shape_cast %20 : vector<16xf32> to vector<16x1xf32>
    %22 = arith.subf %18, %21 : vector<16x1xf32>
    %c7_i32 = arith.constant 7 : i32
    %23 = vector.broadcast %c7_i32 : i32 to vector<16x1xi32>
    %24 = arith.cmpi eq, %1, %23 : vector<16x1xi32>
    %cst_8 = arith.constant 1.000000e-01 : f32
    %cst_9 = arith.constant 1.000000e+00 : f32
    %25 = vector.broadcast %cst_8 : f32 to vector<16x1xf32>
    %26 = vector.broadcast %cst_9 : f32 to vector<16x1xf32>
    %27 = arith.select %24, %25, %26 : vector<16x1xi1>, vector<16x1xf32>
    %cst_10 = arith.constant 0.000000e+00 : f32
    %28 = vector.broadcast %cst_10 : f32 to vector<16x1xf32>
    %29 = arith.select %4, %27, %28 : vector<16x1xi1>, vector<16x1xf32>
    %30 = arith.mulf %29, %22 : vector<16x1xf32>
    %cst_11 = arith.constant dense<0.000000e+00> : vector<16xf32>
    %31 = vector.multi_reduction <add>, %30, %cst_11 [1] : vector<16x1xf32> to vector<16xf32>
    %32 = vector.shape_cast %31 : vector<16xf32> to vector<16x1xf32>
    %cst_12 = arith.constant dense<0.000000e+00> : vector<1xf32>
    %33 = vector.multi_reduction <add>, %32, %cst_12 [0] : vector<16x1xf32> to vector<1xf32>
    %34 = vector.shape_cast %33 : vector<1xf32> to vector<1x1xf32>
    %cst_13 = arith.constant dense<0.000000e+00> : vector<16xf32>
    %35 = vector.multi_reduction <add>, %29, %cst_13 [1] : vector<16x1xf32> to vector<16xf32>
    %36 = vector.shape_cast %35 : vector<16xf32> to vector<16x1xf32>
    %cst_14 = arith.constant dense<0.000000e+00> : vector<1xf32>
    %37 = vector.multi_reduction <add>, %36, %cst_14 [0] : vector<16x1xf32> to vector<1xf32>
    %38 = vector.shape_cast %37 : vector<1xf32> to vector<1x1xf32>
    %39 = arith.divf %34, %38 : vector<1x1xf32>
    %cst_15 = arith.constant dense<0.000000e+00> : vector<16xf32>
    %40 = vector.multi_reduction <add>, %2, %cst_15 [1] : vector<16x1xf32> to vector<16xf32>
    %41 = vector.shape_cast %40 : vector<16xf32> to vector<16x1xf32>
    %cst_16 = arith.constant dense<0.000000e+00> : vector<1xf32>
    %42 = vector.multi_reduction <add>, %41, %cst_16 [0] : vector<16x1xf32> to vector<1xf32>
    %43 = vector.shape_cast %42 : vector<1xf32> to vector<1x1xf32>
    %cst_17 = arith.constant 1.000000e+00 : f32
    %44 = vector.broadcast %cst_17 : f32 to vector<1x1xf32>
    %45 = arith.divf %44, %43 : vector<1x1xf32>
    %c0_18 = arith.constant 0 : index
    %c0_19 = arith.constant 0 : index
    %46 = vector.load %arg3[%c0_18, %c0_19] : memref<16x8xf32, #tpu.memory_space<vmem>>, vector<16x8xf32>
    %47 = vector.extract_strided_slice %46 {offsets = [0, 0], sizes = [16, 4], strides = [1, 1]} : vector<16x8xf32> to vector<16x4xf32>
    %48 = vector.extract_strided_slice %46 {offsets = [0, 4], sizes = [16, 4], strides = [1, 1]} : vector<16x8xf32> to vector<16x4xf32>
    %49 = arith.subf %47, %48 : vector<16x4xf32>
    %50 = math.absf %49 : vector<16x4xf32>
    %cst_20 = arith.constant dense<0.000000e+00> : vector<16xf32>
    %51 = vector.multi_reduction <add>, %50, %cst_20 [1] : vector<16x4xf32> to vector<16xf32>
    %52 = vector.shape_cast %51 : vector<16xf32> to vector<16x1xf32>
    %cst_21 = arith.constant 0.000000e+00 : f32
    %53 = vector.broadcast %cst_21 : f32 to vector<16x1xf32>
    %54 = arith.select %4, %52, %53 : vector<16x1xi1>, vector<16x1xf32>
    %cst_22 = arith.constant dense<0.000000e+00> : vector<16xf32>
    %55 = vector.multi_reduction <add>, %54, %cst_22 [1] : vector<16x1xf32> to vector<16xf32>
    %56 = vector.shape_cast %55 : vector<16xf32> to vector<16x1xf32>
    %cst_23 = arith.constant dense<0.000000e+00> : vector<1xf32>
    %57 = vector.multi_reduction <add>, %56, %cst_23 [0] : vector<16x1xf32> to vector<1xf32>
    %58 = vector.shape_cast %57 : vector<1xf32> to vector<1x1xf32>
    %59 = arith.mulf %58, %45 : vector<1x1xf32>
    %60 = vector.extract_strided_slice %47 {offsets = [0, 0], sizes = [16, 1], strides = [1, 1]} : vector<16x4xf32> to vector<16x1xf32>
    %61 = vector.extract_strided_slice %47 {offsets = [0, 1], sizes = [16, 1], strides = [1, 1]} : vector<16x4xf32> to vector<16x1xf32>
    %62 = vector.extract_strided_slice %47 {offsets = [0, 2], sizes = [16, 1], strides = [1, 1]} : vector<16x4xf32> to vector<16x1xf32>
    %63 = vector.extract_strided_slice %47 {offsets = [0, 3], sizes = [16, 1], strides = [1, 1]} : vector<16x4xf32> to vector<16x1xf32>
    %cst_24 = arith.constant 5.000000e-01 : f32
    %64 = vector.broadcast %cst_24 : f32 to vector<16x1xf32>
    %65 = arith.mulf %64, %62 : vector<16x1xf32>
    %66 = arith.subf %60, %65 : vector<16x1xf32>
    %cst_25 = arith.constant 5.000000e-01 : f32
    %67 = vector.broadcast %cst_25 : f32 to vector<16x1xf32>
    %68 = arith.mulf %67, %63 : vector<16x1xf32>
    %69 = arith.subf %61, %68 : vector<16x1xf32>
    %cst_26 = arith.constant 5.000000e-01 : f32
    %70 = vector.broadcast %cst_26 : f32 to vector<16x1xf32>
    %71 = arith.mulf %70, %62 : vector<16x1xf32>
    %72 = arith.addf %60, %71 : vector<16x1xf32>
    %cst_27 = arith.constant 5.000000e-01 : f32
    %73 = vector.broadcast %cst_27 : f32 to vector<16x1xf32>
    %74 = arith.mulf %73, %63 : vector<16x1xf32>
    %75 = arith.addf %61, %74 : vector<16x1xf32>
    %76 = vector.extract_strided_slice %48 {offsets = [0, 0], sizes = [16, 1], strides = [1, 1]} : vector<16x4xf32> to vector<16x1xf32>
    %77 = vector.extract_strided_slice %48 {offsets = [0, 1], sizes = [16, 1], strides = [1, 1]} : vector<16x4xf32> to vector<16x1xf32>
    %78 = vector.extract_strided_slice %48 {offsets = [0, 2], sizes = [16, 1], strides = [1, 1]} : vector<16x4xf32> to vector<16x1xf32>
    %79 = vector.extract_strided_slice %48 {offsets = [0, 3], sizes = [16, 1], strides = [1, 1]} : vector<16x4xf32> to vector<16x1xf32>
    %cst_28 = arith.constant 5.000000e-01 : f32
    %80 = vector.broadcast %cst_28 : f32 to vector<16x1xf32>
    %81 = arith.mulf %80, %78 : vector<16x1xf32>
    %82 = arith.subf %76, %81 : vector<16x1xf32>
    %cst_29 = arith.constant 5.000000e-01 : f32
    %83 = vector.broadcast %cst_29 : f32 to vector<16x1xf32>
    %84 = arith.mulf %83, %79 : vector<16x1xf32>
    %85 = arith.subf %77, %84 : vector<16x1xf32>
    %cst_30 = arith.constant 5.000000e-01 : f32
    %86 = vector.broadcast %cst_30 : f32 to vector<16x1xf32>
    %87 = arith.mulf %86, %78 : vector<16x1xf32>
    %88 = arith.addf %76, %87 : vector<16x1xf32>
    %cst_31 = arith.constant 5.000000e-01 : f32
    %89 = vector.broadcast %cst_31 : f32 to vector<16x1xf32>
    %90 = arith.mulf %89, %79 : vector<16x1xf32>
    %91 = arith.addf %77, %90 : vector<16x1xf32>
    %92 = arith.subf %72, %66 : vector<16x1xf32>
    %93 = arith.subf %75, %69 : vector<16x1xf32>
    %94 = arith.mulf %92, %93 : vector<16x1xf32>
    %95 = arith.subf %88, %82 : vector<16x1xf32>
    %96 = arith.subf %91, %85 : vector<16x1xf32>
    %97 = arith.mulf %95, %96 : vector<16x1xf32>
    %98 = arith.minimumf %72, %88 : vector<16x1xf32>
    %99 = arith.maximumf %66, %82 : vector<16x1xf32>
    %100 = arith.subf %98, %99 : vector<16x1xf32>
    %cst_32 = arith.constant 0.000000e+00 : f32
    %101 = vector.broadcast %cst_32 : f32 to vector<16x1xf32>
    %102 = arith.maximumf %100, %101 : vector<16x1xf32>
    %103 = arith.minimumf %75, %91 : vector<16x1xf32>
    %104 = arith.maximumf %69, %85 : vector<16x1xf32>
    %105 = arith.subf %103, %104 : vector<16x1xf32>
    %cst_33 = arith.constant 0.000000e+00 : f32
    %106 = vector.broadcast %cst_33 : f32 to vector<16x1xf32>
    %107 = arith.maximumf %105, %106 : vector<16x1xf32>
    %108 = arith.mulf %102, %107 : vector<16x1xf32>
    %109 = arith.addf %94, %97 : vector<16x1xf32>
    %110 = arith.subf %109, %108 : vector<16x1xf32>
    %111 = arith.divf %108, %110 : vector<16x1xf32>
    %112 = arith.maximumf %72, %88 : vector<16x1xf32>
    %113 = arith.minimumf %66, %82 : vector<16x1xf32>
    %114 = arith.subf %112, %113 : vector<16x1xf32>
    %115 = arith.maximumf %75, %91 : vector<16x1xf32>
    %116 = arith.minimumf %69, %85 : vector<16x1xf32>
    %117 = arith.subf %115, %116 : vector<16x1xf32>
    %118 = arith.mulf %114, %117 : vector<16x1xf32>
    %119 = arith.subf %118, %110 : vector<16x1xf32>
    %120 = arith.divf %119, %118 : vector<16x1xf32>
    %121 = arith.subf %111, %120 : vector<16x1xf32>
    %cst_34 = arith.constant 1.000000e+00 : f32
    %122 = vector.broadcast %cst_34 : f32 to vector<16x1xf32>
    %123 = arith.subf %122, %121 : vector<16x1xf32>
    %cst_35 = arith.constant 0.000000e+00 : f32
    %124 = vector.broadcast %cst_35 : f32 to vector<16x1xf32>
    %125 = arith.select %4, %123, %124 : vector<16x1xi1>, vector<16x1xf32>
    %cst_36 = arith.constant dense<0.000000e+00> : vector<16xf32>
    %126 = vector.multi_reduction <add>, %125, %cst_36 [1] : vector<16x1xf32> to vector<16xf32>
    %127 = vector.shape_cast %126 : vector<16xf32> to vector<16x1xf32>
    %cst_37 = arith.constant dense<0.000000e+00> : vector<1xf32>
    %128 = vector.multi_reduction <add>, %127, %cst_37 [0] : vector<16x1xf32> to vector<1xf32>
    %129 = vector.shape_cast %128 : vector<1xf32> to vector<1x1xf32>
    %130 = arith.mulf %129, %45 : vector<1x1xf32>
    %131 = tpu.iota {dimensions = array<i32: 1>} : vector<1x128xi32>
    %c0_i32 = arith.constant 0 : i32
    %132 = vector.broadcast %c0_i32 : i32 to vector<1x128xi32>
    %133 = arith.cmpi eq, %131, %132 : vector<1x128xi32>
    %cst_38 = arith.constant 0.000000e+00 : f32
    %134 = vector.shape_cast %39 : vector<1x1xf32> to vector<1x1xf32>
    %135 = vector.broadcast %134 : vector<1x1xf32> to vector<1x128xf32>
    %136 = vector.broadcast %cst_38 : f32 to vector<1x128xf32>
    %137 = arith.select %133, %135, %136 : vector<1x128xi1>, vector<1x128xf32>
    %c1_i32 = arith.constant 1 : i32
    %138 = vector.broadcast %c1_i32 : i32 to vector<1x128xi32>
    %139 = arith.cmpi eq, %131, %138 : vector<1x128xi32>
    %cst_39 = arith.constant 0.000000e+00 : f32
    %140 = vector.shape_cast %59 : vector<1x1xf32> to vector<1x1xf32>
    %141 = vector.broadcast %140 : vector<1x1xf32> to vector<1x128xf32>
    %142 = vector.broadcast %cst_39 : f32 to vector<1x128xf32>
    %143 = arith.select %139, %141, %142 : vector<1x128xi1>, vector<1x128xf32>
    %144 = arith.addf %137, %143 : vector<1x128xf32>
    %c2_i32 = arith.constant 2 : i32
    %145 = vector.broadcast %c2_i32 : i32 to vector<1x128xi32>
    %146 = arith.cmpi eq, %131, %145 : vector<1x128xi32>
    %cst_40 = arith.constant 0.000000e+00 : f32
    %147 = vector.shape_cast %130 : vector<1x1xf32> to vector<1x1xf32>
    %148 = vector.broadcast %147 : vector<1x1xf32> to vector<1x128xf32>
    %149 = vector.broadcast %cst_40 : f32 to vector<1x128xf32>
    %150 = arith.select %146, %148, %149 : vector<1x128xi1>, vector<1x128xf32>
    %151 = arith.addf %144, %150 : vector<1x128xf32>
    %c0_41 = arith.constant 0 : index
    %c0_42 = arith.constant 0 : index
    %152 = vector.load %arg4[%c0_41, %c0_42] : memref<1x128xf32, #tpu.memory_space<vmem>>, vector<1x128xf32>
    tpu.vector_store %arg4[%c0_41, %c0_42], %151 {strides = array<i32>} : memref<1x128xf32, #tpu.memory_space<vmem>>, vector<1x128xf32>,
    return
  }
}

</mosaic_0001>

<bundles_post_ra>
// kernel: tpu_custom_call.1
= control target key start
LH: loop header
LB: loop body
LE: loop exit
PB: predicated region body
PF: predicated region fallthrough
CT: control target
= control target key end

     0   :  { %s704_s0 = inlined_call_operand.vmem [shape: f32[16,8], index: 0, kind: input, shape index: {}]   ;;  %s705_s1 = inlined_call_operand.vmem [shape: s32[16,1], index: 1, kind: input, shape index: {}]   ;;  %s706_s2 = inlined_call_operand.vmem [shape: f32[16,1], index: 2, kind: input, shape index: {}]   ;;  %s707_s3 = inlined_call_operand.vmem [shape: f32[16,8], index: 3, kind: input, shape index: {}]   ;;  %s708_s4 = inlined_call_operand.hbm [shape: f32[1,128], index: 4, kind: output, shape index: {}]  }
   0x1   :  { %v483_v0 = vld [vmem:[%s707_s3] sm:$0xff] }
   0x2   :  { %v182_v1 = vmul.f32 0.5, %v483_v0 }
   0x3   :  { %9 = vsyncpa [#allocation3], 0  ;;  %s448_s17 = smov 126   ;;  %v489_v2 = vld [vmem:[%s707_s3 + $0x8] sm:$0xff]  ;;  %vm40_vm0 = vcmask 64512   ;;  %v500_v5 = vld [vmem:[%s705_s1] sm:$0xff]  ;;  %v26_v49 = vlaneseq }
   0x4   :  { %186 = vrot.lane.b32.xlu0 %v182_v1, %s448_s17  ;;  %v183_v3 = vmul.f32 0.5, %v489_v2  ;;  %v495_v4 = vld [vmem:[%s704_s0 + $0x8] sm:$0xff]  ;;  %v449_v7 = vmov 0   ;;  %v514_v9 = vld [vmem:[%s704_s0] sm:$0xff]  ;;  %s450_s27 = smov 124   ;;  %s451_s0 = smov 127  }
   0x5   :  { %v44_v6 = vsel %vm40_vm0, %v495_v4, -inf  ;;  %399 = vset.pattern.permute.xlu2 %v449_v7  ;;  %401 = vset.pattern.permute.xlu0 %v449_v7  ;;  %v508_v8 = vld [vmem:[%s705_s1 + $0x8] sm:$0xff]  ;;  %v41_v10 = vsel %vm40_vm0, %v514_v9, -inf  ;;  %v559_v52 = vand.u32 127, %v26_v49  ;;  %v452_v54 = vmov 0.0   ;;  %s381_s8 = sshll.u32 %s708_s4, 4  ;;  %s382_s8 = int_to_ptr.hbm [resolvable:$true] %s381_s8 }
   0x6   :  { %45 = vmax.xlane.f32.xlu1 %v44_v6  ;;  %29 = vperm.xlu2 %399, %v500_v5   ;;  %vm161_vm3 = vcmask 31744   ;;  %vm85_vm4 = vcmask 7168   ;;  %vm75_vm5 = vcmp.eq.s32.totalorder %v500_v5, 7  ;;  %vm76_vm6 = vcmp.eq.s32.totalorder %v508_v8, 7 }
   0x7   :  { %400 = vset.pattern.permute.xlu1 %v449_v7 }
   0xc   :  { %188 = vrot.lane.b32.xlu0 %v183_v3, %s448_s17 }
   0xe   :  { %32 = vperm.xlu2 %399, %v508_v8  }
  0x36   :  { %42 = vmax.xlane.f32.xlu0 %v41_v10 }
  0x60   :  { %v30_v24 = vpop.permute.xlu2 %29 }
  0x61   :  { %vm34_vm1 = vcmp.eq.s32.totalorder %v559_v52, %v30_v24 }
  0x62   :  { %v390_v55 = vsel %vm34_vm1, 1.0, %v452_v54 }
  0x63   :  { %v65_v58 = vmul.f32 %v390_v55, %v514_v9 }
  0x65   :  { %v67_v62 = vsel %vm40_vm0, %v65_v58, 0.0 }
  0x68   :  { %v33_v25 = vpop.permute.xlu2 %32 }
  0x69   :  { %vm35_vm2 = vcmp.eq.s32.totalorder %v559_v52, %v33_v25 }
  0x6a   :  { %v391_v57 = vsel %vm35_vm2, 1.0, %v452_v54 }
  0x6b   :  { %v66_v61 = vmul.f32 %v391_v57, %v495_v4 }
  0x6d   :  { %v70_v6 = vsel %vm40_vm0, %v66_v61, 0.0 }
  0x76   :  { %v187_v11 = vpop.permute.xlu0 %186 }
  0x77   :  { %v192_v12 = vsub.f32 %v483_v0, %v187_v11  ;;  %v194_v13 = vadd.f32 %v187_v11, %v483_v0  ;;  %v578_v11 = vld [vmem:[%s706_s2 + $0x8] sm:$0xff] }
  0x78   :  { %vm25_vm8 = vcmp.gt.f32.partialorder %v578_v11, 0.5 }
  0x79   :  { %220 = vrot.lane.b32.xlu2 %v192_v12, %s450_s27  ;;  %210 = vrot.lane.b32.xlu1 %v194_v13, %s450_s27  ;;  %v196_v17 = vsub.f32 %v194_v13, %v192_v12  ;;  %v537_v28 = vpop.xlane.xlu1 %45 }
  0x7a   :  { %v48_v50 = vsub.f32 %v495_v4, %v537_v28 }
  0x7c   :  { %v51_v53 = vmul.f32 1.442695, %v48_v50 }
  0x7e   :  { %v189_v14 = vpop.permute.xlu0 %188 }
  0x7f   :  { %v193_v15 = vsub.f32 %v489_v2, %v189_v14  ;;  %v195_v16 = vadd.f32 %v189_v14, %v489_v2 }
  0x81   :  { %222 = vrot.lane.b32.xlu2 %v193_v15, %s450_s27  ;;  %212 = vrot.lane.b32.xlu1 %v195_v16, %s450_s27  ;;  %v197_v18 = vsub.f32 %v195_v16, %v193_v15 }
  0x89   :  { %200 = vrot.lane.b32.xlu2 %v196_v17, %s451_s0 }
  0x91   :  { %202 = vrot.lane.b32.xlu2 %v197_v18, %s451_s0 }
  0x99   :  { %151 = vrot.lane.b32.xlu2 %v483_v0, %s450_s27 }
  0xa1   :  { %153 = vrot.lane.b32.xlu2 %v489_v2, %s450_s27 }
  0xa9   :  { %v532_v19 = vpop.xlane.xlu0 %42 }
  0xaa   :  { %v47_v20 = vsub.f32 %v514_v9, %v532_v19 }
  0xac   :  { %v49_v21 = vmul.f32 1.442695, %v47_v20 }
  0xae   :  { %402 = vpow2.f32 %v49_v21 }
  0xaf   :  { %404 = vpow2.f32 %v51_v53 }
  0xb4   :  { %v403_v22 = vpop.eup %402 }
  0xb5   :  { %v53_v23 = vsel %vm40_vm0, %v403_v22, 0.0  ;;  %v405_v59 = vpop.eup %404 }
  0xb6   :  { %54 = vadd.xlane.f32.xlu1 %v53_v23  ;;  %v56_v1 = vsel %vm40_vm0, %v405_v59, 0.0 }
  0xd3   :  { %v221_v26 = vpop.permute.xlu2 %220 }
  0xd4   :  { %v286_v33 = vmin.f32 %v192_v12, %v221_v26  ;;  %v226_v38 = vmax.f32 %v192_v12, %v221_v26 }
  0xdb   :  { %v223_v27 = vpop.permute.xlu2 %222 }
  0xdc   :  { %v227_v41 = vmax.f32 %v193_v15, %v223_v27  ;;  %v287_v42 = vmin.f32 %v193_v15, %v223_v27 }
  0xe3   :  { %v201_v29 = vpop.permute.xlu2 %200 }
  0xe4   :  { %v539_v30 = vmul.f32 %v201_v29, %v196_v17 }
  0xe6   :  { %244 = vrot.lane.b32.xlu2 %v539_v30, %s450_s27 }
  0xeb   :  { %v203_v31 = vpop.permute.xlu2 %202  ;;  %v211_v32 = vpop.permute.xlu1 %210 }
  0xec   :  { %v543_v34 = vmul.f32 %v203_v31, %v197_v18  ;;  %v284_v35 = vmax.f32 %v194_v13, %v211_v32  ;;  %v216_v36 = vmin.f32 %v194_v13, %v211_v32  ;;  %v124_v13 = vsel %vm85_vm4, %v578_v11, 0.0 }
  0xee   :  { %v288_v37 = vsub.f32 %v284_v35, %v286_v33  ;;  %246 = vrot.lane.b32.xlu2 %v543_v34, %s450_s27  ;;  %v548_v39 = vsub.f32 %v216_v36, %v226_v38  ;;  %v453_v38 = vmov 1.0  }
  0xf0   :  { %292 = vrot.lane.b32.xlu0 %v288_v37, %s451_s0  ;;  %v230_v47 = vmax.f32 %v548_v39, 0.0  ;;  %v77_v39 = vsel %vm75_vm5, 0.1, %v453_v38 }
  0xf3   :  { %v213_v40 = vpop.permute.xlu1 %212  ;;  %v152_v51 = vpop.permute.xlu2 %151 }
  0xf4   :  { %v217_v43 = vmin.f32 %v195_v16, %v213_v40  ;;  %v285_v44 = vmax.f32 %v195_v16, %v213_v40  ;;  %v157_v63 = vsub.f32 %v483_v0, %v152_v51  ;;  %v573_v0 = vld [vmem:[%s706_s2] sm:$0xff]  ;;  %s454_s2 = smov [#allocation2]  }
  0xf5   :  { %v123_v12 = vsel %vm85_vm4, %v573_v0, 0.0  ;;  %vm24_vm7 = vcmp.gt.f32.partialorder %v573_v0, 0.5  ;;  %s379_s5 = sshll.u32 %s454_s2, 4  ;;  %s380_s5 = int_to_ptr.vmem [resolvable:$true] %s379_s5 }
  0xf6   :  { %v550_v45 = vsub.f32 %v217_v43, %v227_v41  ;;  %v289_v46 = vsub.f32 %v285_v44, %v287_v42  ;;  %v159_v7 = vand.u32 2147483647, %v157_v63  ;;  %v125_v15 = vadd.f32 %v124_v13, %v123_v12 }
  0xf7   :  { %v618_v42 = vsel %vm24_vm7, %v77_v39, 0.0  ;;  %v78_v44 = vsel %vm76_vm6, 0.1, %v453_v38 }
  0xf8   :  { %294 = vrot.lane.b32.xlu2 %v289_v46, %s451_s0  ;;  %234 = vrot.lane.b32.xlu0 %v230_v47, %s451_s0  ;;  %v231_v48 = vmax.f32 %v550_v45, 0.0  ;;  %v162_v10 = vsel %vm161_vm3, %v159_v7, 0.0  ;;  %v126_v17 = vrot.slane %v125_v15, 4  ;;  %v97_v8 = vsel %vm85_vm4, %v618_v42, 0.0 }
  0xfa   :  { %236 = vrot.lane.b32.xlu1 %v231_v48, %s451_s0  ;;  %v127_v22 = vadd.f32 %v126_v17, %v125_v15 }
  0xfb   :  { %v154_v56 = vpop.permute.xlu2 %153 }
  0xfc   :  { %v158_v60 = vsub.f32 %v489_v2, %v154_v56  ;;  %v128_v23 = vrot.slane %v127_v22, 2 }
  0xfe   :  { %v160_v3 = vand.u32 2147483647, %v158_v60 }
 0x100   :  { %v165_v9 = vsel %vm161_vm3, %v160_v3, 0.0 }
 0x121   :  { %68 = vadd.xlane.f32.xlu2 %v67_v62 }
 0x122   :  { %57 = vadd.xlane.f32.xlu0 %v56_v1 }
 0x124   :  { %71 = vadd.xlane.f32.xlu1 %v70_v6 }
 0x129   :  { %166 = vadd.xlane.f32.xlu2 %v165_v9  ;;  %v588_v21 = vpop.xlane.xlu1 %54 }
 0x12a   :  { %163 = vadd.xlane.f32.xlu0 %v162_v10 }
 0x140   :  { %v245_v2 = vpop.permute.xlu2 %244 }
 0x141   :  { %v250_v27 = vadd.f32 %v245_v2, %v539_v30 }
 0x148   :  { %v247_v4 = vpop.permute.xlu2 %246 }
 0x149   :  { %v251_v5 = vadd.f32 %v247_v4, %v543_v34 }
 0x152   :  { %v295_v14 = vpop.permute.xlu2 %294 }
 0x153   :  { %v584_v16 = vmul.f32 %v295_v14, %v289_v46 }
 0x155   :  { %406 = vrcp.f32 %v584_v16  ;;  %vm322_vm9 = vweird.f32 %v584_v16  ;;  %v326_v55 = vand.u32 2147483647, %v584_v16  ;;  %v328_v60 = vand.u32 2147483648, %v584_v16 }
 0x15b   :  { %v592_v24 = vpop.eup %406 }
 0x15c   :  { %v318_v33 = vmul.f32 %v592_v24, %v584_v16  ;;  %vm323_vm13 = vweird.f32 %v592_v24 }
 0x15d   :  { %vm659_vm1 = vmor %vm322_vm9, %vm323_vm13 }
 0x15e   :  { %v319_v41 = vsub.f32 1.0, %v318_v33 }
 0x160   :  { %v320_v46 = vmul.f32 %v592_v24, %v319_v41 }
 0x162   :  { %v293_v18 = vpop.permute.xlu0 %292  ;;  %v321_v62 = vadd.f32 %v592_v24, %v320_v46 }
 0x163   :  { %v586_v20 = vmul.f32 %v293_v18, %v288_v37  ;;  %v129_v37 = vadd.f32 %v128_v23, %v127_v22 }
 0x164   :  { %v325_v23 = vsel %vm659_vm1, %v592_v24, %v321_v62  ;;  %vm357_vm1 = vcmp.eq.s32.totalorder %v559_v52, 1 }
 0x165   :  { %408 = vrcp.f32 %v586_v20  ;;  %v130_v43 = vrot.slane %v129_v37, 1  ;;  %v311_v53 = vand.u32 2147483647, %v586_v20  ;;  %v313_v54 = vand.u32 2147483648, %v586_v20 }
 0x166   :  { %vm307_vm11 = vweird.f32 %v586_v20 }
 0x167   :  { %vm312_vm15 = vcmp.eq.f32.partialorder %v311_v53, 8.507059e+37  ;;  %v314_v7 = vor.u32 1.1754944e-38, %v313_v54 }
 0x16a   :  { %v235_v25 = vpop.permute.xlu0 %234 }
 0x16b   :  { %v594_v26 = vpop.eup %408  ;;  %v598_v29 = vmul.f32 %v235_v25, %v230_v47  ;;  %v629_v47 = vsel %vm25_vm8, %v78_v44, 0.0 }
 0x16c   :  { %v303_v31 = vmul.f32 %v594_v26, %v586_v20  ;;  %v237_v32 = vpop.permute.xlu1 %236  ;;  %vm308_vm10 = vweird.f32 %v594_v26  ;;  %v98_v51 = vsel %vm85_vm4, %v629_v47, 0.0 }
 0x16d   :  { %v605_v35 = vsub.f32 %v250_v27, %v598_v29  ;;  %v607_v36 = vmul.f32 %v237_v32, %v231_v48  ;;  %v631_v48 = vadd.f32 %v130_v43, %v129_v37  ;;  %v99_v56 = vadd.f32 %v98_v51, %v97_v8  ;;  %vm644_vm12 = vmor %vm307_vm11, %vm308_vm10 }
 0x16e   :  { %v304_v30 = vsub.f32 1.0, %v303_v31  ;;  %v329_v37 = vor.u32 1.1754944e-38, %v328_v60  ;;  %vm327_vm10 = vcmp.eq.f32.partialorder %v326_v55, 8.507059e+37 }
 0x16f   :  { %410 = vrcp.f32 %v605_v35  ;;  %v613_v40 = vsub.f32 %v251_v5, %v607_v36  ;;  %v265_v59 = vand.u32 2147483648, %v605_v35  ;;  %v263_v6 = vand.u32 2147483647, %v605_v35 }
 0x170   :  { %v305_v45 = vmul.f32 %v594_v26, %v304_v30  ;;  %vm259_vm0 = vweird.f32 %v605_v35  ;;  %v100_v17 = vrot.slane %v99_v56, 4  ;;  %v300_v22 = vsub.f32 %v586_v20, %v605_v35 }
 0x171   :  { %412 = vrcp.f32 %v613_v40  ;;  %v266_v2 = vor.u32 1.1754944e-38, %v265_v59  ;;  %v278_v12 = vand.u32 2147483647, %v613_v40  ;;  %v280_v13 = vand.u32 2147483648, %v613_v40 }
 0x172   :  { %v306_v49 = vadd.f32 %v594_v26, %v305_v45  ;;  %414 = vrcp.f32 %v631_v48  ;;  %vm264_vm5 = vcmp.eq.f32.partialorder %v263_v6, 8.507059e+37  ;;  %vm274_vm6 = vweird.f32 %v613_v40 }
 0x173   :  { %v301_v31 = vsub.f32 %v584_v16, %v613_v40  ;;  %v281_v38 = vor.u32 1.1754944e-38, %v280_v13  ;;  %vm279_vm11 = vcmp.eq.f32.partialorder %v278_v12, 8.507059e+37  ;;  %v330_v24 = vsel %vm327_vm10, %v329_v37, %v325_v23 }
 0x174   :  { %v310_v1 = vsel %vm644_vm12, %v594_v26, %v306_v49  ;;  %vm137_vm12 = vweird.f32 %v631_v48  ;;  %416 = vlog2.f32 %v588_v21  ;;  %v143_v55 = vand.u32 2147483648, %v631_v48 }
 0x175   :  { %v411_v34 = vpop.eup %410  ;;  %v315_v14 = vsel %vm312_vm15, %v314_v7, %v310_v1  ;;  %v331_v41 = vmul.f32 %v330_v24, %v301_v31 }
 0x176   :  { %v255_v50 = vmul.f32 %v411_v34, %v605_v35  ;;  %vm260_vm14 = vweird.f32 %v411_v34  ;;  %v316_v33 = vmul.f32 %v315_v14, %v300_v22  ;;  %v101_v35 = vadd.f32 %v100_v17, %v99_v56 }
 0x177   :  { %v413_v57 = vpop.eup %412  ;;  %vm261_vm2 = vmor %vm259_vm0, %vm260_vm14  ;;  %v144_v61 = vor.u32 1.1754944e-38, %v143_v55 }
 0x178   :  { %v256_v58 = vsub.f32 1.0, %v255_v50  ;;  %v270_v63 = vmul.f32 %v413_v57, %v613_v40  ;;  %vm275_vm3 = vweird.f32 %v413_v57  ;;  %v415_v25 = vpop.eup %414  ;;  %v102_v40 = vrot.slane %v101_v35, 2 }
 0x179   :  { %vm276_vm9 = vmor %vm274_vm6, %vm275_vm3  ;;  %v133_v43 = vmul.f32 %v415_v25, %v631_v48  ;;  %vm138_vm13 = vweird.f32 %v415_v25  ;;  %vm365_vm3 = vcmp.eq.s32.totalorder %v559_v52, 2 }
 0x17a   :  { %v257_v3 = vmul.f32 %v411_v34, %v256_v58  ;;  %v271_v9 = vsub.f32 1.0, %v270_v63  ;;  %vm139_vm14 = vmor %vm137_vm12, %vm138_vm13  ;;  %v417_v1 = vpop.eup %416 }
 0x17b   :  { %v134_v8 = vsub.f32 1.0, %v133_v43 }
 0x17c   :  { %v258_v10 = vadd.f32 %v411_v34, %v257_v3  ;;  %v272_v15 = vmul.f32 %v413_v57, %v271_v9  ;;  %v60_v9 = vmul.f32 0.6931472, %v417_v1 }
 0x17d   :  { %v135_v51 = vmul.f32 %v415_v25, %v134_v8 }
 0x17e   :  { %v262_v18 = vsel %vm261_vm2, %v411_v34, %v258_v10  ;;  %v273_v27 = vadd.f32 %v413_v57, %v272_v15  ;;  %v103_v34 = vadd.f32 %v102_v40, %v101_v35  ;;  %vm350_vm2 = vcmp.eq.s32.totalorder %v559_v52, 0 }
 0x17f   :  { %v267_v26 = vsel %vm264_vm5, %v266_v2, %v262_v18  ;;  %v136_v56 = vadd.f32 %v415_v25, %v135_v51 }
 0x180   :  { %v268_v32 = vmul.f32 %v267_v26, %v598_v29  ;;  %v277_v20 = vsel %vm276_vm9, %v413_v57, %v273_v27  ;;  %v104_v53 = vrot.slane %v103_v34, 1  ;;  %v141_v57 = vand.u32 2147483647, %v631_v48 }
 0x181   :  { %v282_v5 = vsel %vm279_vm11, %v281_v38, %v277_v20  ;;  %v140_v62 = vsel %vm139_vm14, %v415_v25, %v136_v56  ;;  %v63_v48 = vadd.f32 %v60_v9, %v532_v19 }
 0x182   :  { %v332_v39 = vsub.f32 %v268_v32, %v316_v33  ;;  %v283_v30 = vmul.f32 %v282_v5, %v607_v36  ;;  %v105_v59 = vadd.f32 %v104_v53, %v103_v34  ;;  %vm142_vm15 = vcmp.eq.f32.partialorder %v141_v57, 8.507059e+37 }
 0x183   :  { %v145_v21 = vsel %vm142_vm15, %v144_v61, %v140_v62 }
 0x184   :  { %v334_v44 = vsub.f32 1.0, %v332_v39  ;;  %v333_v16 = vsub.f32 %v283_v30, %v331_v41  ;;  %418 = vrcp.f32 %v105_v59  ;;  %v117_v41 = vand.u32 2147483648, %v105_v59 }
 0x186   :  { %v335_v29 = vsub.f32 1.0, %v333_v16  ;;  %v336_v45 = vsel %vm24_vm7, %v334_v44, 0.0  ;;  %v115_v16 = vand.u32 2147483647, %v105_v59 }
 0x187   :  { %v340_v49 = vsel %vm85_vm4, %v336_v45, 0.0 }
 0x188   :  { %v337_v46 = vsel %vm25_vm8, %v335_v29, 0.0  ;;  %v118_v29 = vor.u32 1.1754944e-38, %v117_v41 }
 0x189   :  { %v341_v50 = vsel %vm85_vm4, %v337_v46, 0.0 }
 0x18a   :  { %v342_v36 = vadd.f32 %v341_v50, %v340_v49  ;;  %v419_v4 = vpop.eup %418 }
 0x18b   :  { %v107_v25 = vmul.f32 %v419_v4, %v105_v59 }
 0x18c   :  { %v343_v54 = vrot.slane %v342_v36, 4 }
 0x18d   :  { %v108_v38 = vsub.f32 1.0, %v107_v25 }
 0x18e   :  { %v344_v58 = vadd.f32 %v343_v54, %v342_v36 }
 0x18f   :  { %v109_v5 = vmul.f32 %v419_v4, %v108_v38 }
 0x190   :  { %v345_v60 = vrot.slane %v344_v58, 2 }
 0x191   :  { %v110_v44 = vadd.f32 %v419_v4, %v109_v5 }
 0x192   :  { %v346_v63 = vadd.f32 %v345_v60, %v344_v58 }
 0x194   :  { %v69_v3 = vpop.xlane.xlu2 %68  ;;  %v347_v7 = vrot.slane %v346_v63, 1 }
 0x195   :  { %v58_v6 = vpop.xlane.xlu0 %57  ;;  %v73_v14 = vsub.f32 %v63_v48, %v69_v3 }
 0x196   :  { %420 = vlog2.f32 %v58_v6  ;;  %v348_v10 = vadd.f32 %v347_v7, %v346_v63 }
 0x197   :  { %v72_v19 = vpop.xlane.xlu1 %71  ;;  %v81_v32 = vmul.f32 %v618_v42, %v73_v14 }
 0x198   :  { %v349_v2 = vmul.f32 %v348_v10, %v145_v21 }
 0x199   :  { %v86_v35 = vsel %vm85_vm4, %v81_v32, 0.0 }
 0x19a   :  { %368 = vperm.xlu2 %399, %v349_v2  }
 0x19c   :  { %v421_v12 = vpop.eup %420  ;;  %v167_v13 = vpop.xlane.xlu2 %166 }
 0x19d   :  { %v62_v15 = vmul.f32 0.6931472, %v421_v12  ;;  %v169_v17 = vsel %vm25_vm8, %v167_v13, 0.0  ;;  %v164_v18 = vpop.xlane.xlu0 %163  ;;  %vm112_vm8 = vweird.f32 %v419_v4 }
 0x19e   :  { %v173_v22 = vsel %vm85_vm4, %v169_v17, 0.0  ;;  %v168_v23 = vsel %vm24_vm7, %v164_v18, 0.0  ;;  %vm111_vm7 = vweird.f32 %v105_v59 }
 0x19f   :  { %v64_v26 = vadd.f32 %v62_v15, %v537_v28  ;;  %v172_v27 = vsel %vm85_vm4, %v168_v23, 0.0  ;;  %vm113_vm0 = vmor %vm111_vm7, %vm112_vm8 }
 0x1a0   :  { %v174_v31 = vadd.f32 %v173_v22, %v172_v27  ;;  %v114_v34 = vsel %vm113_vm0, %v419_v4, %v110_v44 }
 0x1a1   :  { %v74_v33 = vsub.f32 %v64_v26, %v72_v19 }
 0x1a2   :  { %v175_v37 = vrot.slane %v174_v31, 4 }
 0x1a3   :  { %v82_v11 = vmul.f32 %v629_v47, %v74_v33 }
 0x1a4   :  { %v176_v20 = vadd.f32 %v175_v37, %v174_v31 }
 0x1a5   :  { %v87_v0 = vsel %vm85_vm4, %v82_v11, 0.0  ;;  %vm116_vm4 = vcmp.eq.f32.partialorder %v115_v16, 8.507059e+37 }
 0x1a6   :  { %v88_v39 = vadd.f32 %v87_v0, %v86_v35  ;;  %v177_v24 = vrot.slane %v176_v20, 2  ;;  %v119_v49 = vsel %vm116_vm4, %v118_v29, %v114_v34 }
 0x1a8   :  { %v89_v28 = vrot.slane %v88_v39, 4  ;;  %v178_v30 = vadd.f32 %v177_v24, %v176_v20 }
 0x1aa   :  { %v90_v43 = vadd.f32 %v89_v28, %v88_v39  ;;  %v179_v42 = vrot.slane %v178_v30, 1 }
 0x1ac   :  { %v91_v40 = vrot.slane %v90_v43, 2  ;;  %v180_v47 = vadd.f32 %v179_v42, %v178_v30 }
 0x1ae   :  { %v181_v45 = vmul.f32 %v180_v47, %v145_v21  ;;  %v92_v8 = vadd.f32 %v91_v40, %v90_v43 }
 0x1b0   :  { %360 = vperm.xlu0 %401, %v181_v45   ;;  %v93_v46 = vrot.slane %v92_v8, 1 }
 0x1b2   :  { %v94_v50 = vadd.f32 %v93_v46, %v92_v8 }
 0x1b4   :  { %v120_v36 = vmul.f32 %v119_v49, %v94_v50 }
 0x1b6   :  { %353 = vperm.xlu1 %400, %v120_v36  }
 0x1f4   :  { %v369_v53 = vpop.permute.xlu2 %368 }
 0x1f5   :  { %v371_v58 = vsel %vm365_vm3, %v369_v53, 0.0 }
 0x222   :  { %v361_v51 = vpop.permute.xlu0 %360 }
 0x223   :  { %v363_v55 = vsel %vm357_vm1, %v361_v51, 0.0 }
 0x228   :  { %v354_v54 = vpop.permute.xlu1 %353 }
 0x229   :  { %v356_v56 = vsel %vm350_vm2, %v354_v54, 0.0 }
 0x22a   :  { %v364_v57 = vadd.f32 %v363_v55, %v356_v56 }
 0x22c   :  { %v372_v59 = vadd.f32 %v371_v58, %v364_v57 }
 0x22e   :  { %373 = vst [vmem:[#allocation2] sm:$0x1] %v372_v59 }
 0x22f   :  { %384 = dma.vmem_to_hbm [thread:$0]  %s380_s5, 16, %s382_s8, [#allocation3]  }
 0x230   :  { %446 = dma.done.wait [#allocation3], 16  }
 0x231   :  { %447 = vsyncadd [#allocation3], 4294967280 }
 0x232   :  { %389 = vsyncpa [#allocation3], 1 }

</bundles_post_ra>
